<compile_context>
chip_gen: v7x
topology: tpu7x:2x2x1
jax: 0.10.0
libtpu: 0.0.40
codegen_flags: <defaults>
</compile_context>

<pallas_src>
import functools

import jax
import jax.numpy as jnp
from jax.experimental import pallas as pl
from jax.experimental.pallas import tpu as pltpu


def _graph_nonlocal_kernel(x_ref, pg_ref, pr_ref, wtpg_ref, btpg_ref,
                           ww_ref, bw_ref, bns_ref, bnb_ref, o_ref,
                           *, batch, n_nodes, ci, sub_sample):
    n_pool = n_nodes // sub_sample
    x = x_ref[...]                                             # (B*N, C)

    # Fused grouped_order gather: block-diagonal one-hot permutation matmul.
    xg = jnp.dot(pg_ref[...], x, preferred_element_type=jnp.float32)      # (B*N, C)

    # Fused theta/phi/g 1x1 convs: one matmul, then lane slices.
    proj = jnp.dot(xg, wtpg_ref[...], preferred_element_type=jnp.float32) \
        + btpg_ref[...]                                        # (B*N, 3*Ci)
    theta = proj[:, :ci]                                       # (B*N, Ci)
    phi = proj[:, ci:2 * ci]
    g = proj[:, 2 * ci:3 * ci]

    # MaxPool1d(kernel_size=sub_sample) along nodes: reshape + reduce.
    # (windows never cross batch boundaries since N % sub_sample == 0)
    phi_p = jnp.max(phi.reshape(batch * n_pool, sub_sample, ci), axis=1)  # (B*Np, Ci)
    g_p = jnp.max(g.reshape(batch * n_pool, sub_sample, ci), axis=1)

    theta_b = theta.reshape(batch, n_nodes, ci)                # (B, N, Ci)
    phi_pb = phi_p.reshape(batch, n_pool, ci)                  # (B, Np, Ci)
    g_pb = g_p.reshape(batch, n_pool, ci)                      # (B, Np, Ci)

    # Embedded-gaussian attention (batched): f = theta @ phi^T, softmax over Np.
    f = jax.lax.dot_general(theta_b, phi_pb, (((2,), (2,)), ((0,), (0,))),
                            preferred_element_type=jnp.float32)           # (B, N, Np)
    f = f - jnp.max(f, axis=-1, keepdims=True)
    e = jnp.exp(f)
    inv_den = pl.reciprocal(jnp.sum(e, axis=-1, keepdims=True), approx=True)
    att = e * inv_den
    y = jax.lax.dot_general(att, g_pb, (((2,), (1,)), ((0,), (0,))),
                            preferred_element_type=jnp.float32)           # (B, N, Ci)
    y = y.reshape(batch * n_nodes, ci)

    # W: 1x1 conv back to C channels, then BatchNorm1d folded to an affine.
    # TODO(synk): PyTorch default trains BN with batch statistics; here BN uses
    # running stats (inference semantics).
    wy = jnp.dot(y, ww_ref[...], preferred_element_type=jnp.float32) + bw_ref[...]
    wy = wy * bns_ref[...] + bnb_ref[...]
    z = wy + xg                                                # residual (grouped order)

    # Fused restored_order gather: permutation matmul.
    o_ref[...] = jnp.dot(pr_ref[...], z,
                         preferred_element_type=jnp.float32).astype(o_ref.dtype)


def graph_nonlocal_pallas(x, params, grouped_order, restored_order, sub_sample):
    """x: (B, N, C) float32.  Returns (B, N, C)."""
    b, n, c = x.shape
    ci = params["theta_wt"].shape[1]
    rows = b * n

    # One-hot permutation matrices (fused gathers become MXU matmuls in-kernel).
    eye_n = jnp.eye(n, dtype=jnp.float32)
    p_group = eye_n[grouped_order]                 # xg[i] = x[grouped_order[i]]
    p_restore = eye_n[restored_order]
    eye_b = jnp.eye(b, dtype=jnp.float32)
    pg_big = jnp.kron(eye_b, p_group)              # (B*N, B*N) block-diagonal
    pr_big = jnp.kron(eye_b, p_restore)

    # Fuse theta/phi/g projection weights host-side.
    w_tpg = jnp.concatenate([params["theta_wt"], params["phi_wt"], params["g_wt"]],
                            axis=1)                # (C, 3*Ci)
    b_tpg = jnp.concatenate([params["theta_b"], params["phi_b"], params["g_b"]],
                            axis=1)                # (1, 3*Ci)

    x_flat = x.reshape(rows, c)                    # contiguous -> layout-only reshape

    kernel = functools.partial(_graph_nonlocal_kernel, batch=b, n_nodes=n,
                               ci=ci, sub_sample=sub_sample)

    def full(shape):
        return pl.BlockSpec(shape, lambda i: tuple(0 for _ in shape))

    out_flat = pl.pallas_call(
        kernel,
        out_shape=jax.ShapeDtypeStruct((rows, c), jnp.float32),
        grid=(1,),                                 # single invocation: overhead-bound size
        in_specs=[
            full((rows, c)),       # x (flattened batch)
            full((rows, rows)),    # grouped-order block-diag permutation
            full((rows, rows)),    # restored-order block-diag permutation
            full((c, 3 * ci)),     # fused theta/phi/g weight (pre-transposed)
            full((1, 3 * ci)),     # fused theta/phi/g bias
            full((ci, c)),         # W weight (pre-transposed)
            full((1, c)),          # W bias
            full((1, c)),          # folded BN scale
            full((1, c)),          # folded BN shift
        ],
        out_specs=full((rows, c)),
        compiler_params=pltpu.CompilerParams(dimension_semantics=("arbitrary",)),
    )(x_flat, pg_big, pr_big, w_tpg, b_tpg, params["w_wt"], params["w_b"],
      params["bn_scale"], params["bn_shift"])

    return out_flat.reshape(b, n, c)


def graph_nonlocal_reference(x, params, grouped_order, restored_order, sub_sample):
    """Pure-JAX reference mirroring the PyTorch forward (eval-mode BN)."""
    xg = x[:, grouped_order, :]                               # (B, N, C)
    bsz, n, _ = xg.shape
    ci = params["theta_wt"].shape[1]
    np_ = n // sub_sample

    theta = xg @ params["theta_wt"] + params["theta_b"]       # (B, N, Ci)
    phi = xg @ params["phi_wt"] + params["phi_b"]
    g = xg @ params["g_wt"] + params["g_b"]

    phi_p = jnp.max(phi.reshape(bsz, np_, sub_sample, ci), axis=2)
    g_p = jnp.max(g.reshape(bsz, np_, sub_sample, ci), axis=2)

    f = jnp.einsum("bnc,bpc->bnp", theta, phi_p)
    att = jax.nn.softmax(f, axis=-1)
    y = jnp.einsum("bnp,bpc->bnc", att, g_p)

    wy = y @ params["w_wt"] + params["w_b"]
    wy = wy * params["bn_scale"] + params["bn_shift"]
    z = wy + xg
    return z[:, restored_order, :]


if __name__ == "__main__":
    B, N, C = 2, 16, 32          # batch, nodes (joints), hid_dim
    group_size = 4               # sub_sample for GraphNonLocal
    Ci = C // 2                  # inter_channels = hid_dim // 2

    key = jax.random.PRNGKey(0)
    ks = jax.random.split(key, 14)

    x = jax.random.normal(ks[0], (B, N, C), jnp.float32)
    grouped_order = jax.random.permutation(ks[1], N)
    restored_order = jnp.argsort(grouped_order)

    # Deterministic synthetic parameters (Conv1d k=1 weights stored pre-transposed
    # as (in_ch, out_ch); the original zero-init of the BN gamma would make the
    # block an identity, so random values are used to exercise the compute path).
    def wmat(k, i, o):
        return 0.1 * jax.random.normal(k, (i, o), jnp.float32)

    eps = 1e-5
    gamma = 1.0 + 0.1 * jax.random.normal(ks[10], (1, C), jnp.float32)
    beta = 0.1 * jax.random.normal(ks[11], (1, C), jnp.float32)
    run_mean = 0.1 * jax.random.normal(ks[12], (1, C), jnp.float32)
    run_var = 1.0 + 0.1 * jnp.abs(jax.random.normal(ks[13], (1, C), jnp.float32))
    bn_scale = gamma / jnp.sqrt(run_var + eps)
    bn_shift = beta - run_mean * bn_scale

    params = {
        "theta_wt": wmat(ks[2], C, Ci),
        "theta_b": 0.1 * jax.random.normal(ks[3], (1, Ci), jnp.float32),
        "phi_wt": wmat(ks[4], C, Ci),
        "phi_b": 0.1 * jax.random.normal(ks[5], (1, Ci), jnp.float32),
        "g_wt": wmat(ks[6], C, Ci),
        "g_b": 0.1 * jax.random.normal(ks[7], (1, Ci), jnp.float32),
        "w_wt": wmat(ks[8], Ci, C),
        "w_b": 0.1 * jax.random.normal(ks[9], (1, C), jnp.float32),
        "bn_scale": bn_scale,
        "bn_shift": bn_shift,
    }

    out = graph_nonlocal_pallas(x, params, grouped_order, restored_order, group_size)
    out = jax.block_until_ready(out)

    ref = graph_nonlocal_reference(x, params, grouped_order, restored_order, group_size)
    assert out.shape == (B, N, C) and out.dtype == jnp.float32
    # Tolerance loosened (vs 1e-4) because the softmax denominator uses the
    # EUP approximate reciprocal (pl.reciprocal(..., approx=True)).
    assert jnp.allclose(out, ref, atol=1e-2, rtol=1e-2), float(jnp.max(jnp.abs(out - ref)))

    print("KERNEL_OK")
</pallas_src>

<mosaic_0001>
module attributes {stable_mosaic.version = 11 : i64} {
  func.func @_graph_nonlocal_kernel(%arg0: i32, %arg1: memref<32x32xf32, #tpu.memory_space<vmem>>, %arg2: memref<32x32xf32, #tpu.memory_space<vmem>>, %arg3: memref<32x32xf32, #tpu.memory_space<vmem>>, %arg4: memref<32x48xf32, #tpu.memory_space<vmem>>, %arg5: memref<1x48xf32, #tpu.memory_space<vmem>>, %arg6: memref<16x32xf32, #tpu.memory_space<vmem>>, %arg7: memref<1x32xf32, #tpu.memory_space<vmem>>, %arg8: memref<1x32xf32, #tpu.memory_space<vmem>>, %arg9: memref<1x32xf32, #tpu.memory_space<vmem>>, %arg10: memref<32x32xf32, #tpu.memory_space<vmem>>) attributes {dimension_semantics = [#tpu.dimension_semantics<arbitrary>], iteration_bounds = array<i64: 1>, scalar_prefetch = 0 : i64, scratch_operands = 0 : i64, tpu.core_type = #tpu.core_type<tc>, window_params = [{pipeline_mode = #tpu.pipeline_mode<synchronous>, transform_indices = @transform_0, window_bounds = array<i64: 32, 32>}, {pipeline_mode = #tpu.pipeline_mode<synchronous>, transform_indices = @transform_1, window_bounds = array<i64: 32, 32>}, {pipeline_mode = #tpu.pipeline_mode<synchronous>, transform_indices = @transform_2, window_bounds = array<i64: 32, 32>}, {pipeline_mode = #tpu.pipeline_mode<synchronous>, transform_indices = @transform_3, window_bounds = array<i64: 32, 48>}, {pipeline_mode = #tpu.pipeline_mode<synchronous>, transform_indices = @transform_4, window_bounds = array<i64: 1, 48>}, {pipeline_mode = #tpu.pipeline_mode<synchronous>, transform_indices = @transform_5, window_bounds = array<i64: 16, 32>}, {pipeline_mode = #tpu.pipeline_mode<synchronous>, transform_indices = @transform_6, window_bounds = array<i64: 1, 32>}, {pipeline_mode = #tpu.pipeline_mode<synchronous>, transform_indices = @transform_7, window_bounds = array<i64: 1, 32>}, {pipeline_mode = #tpu.pipeline_mode<synchronous>, transform_indices = @transform_8, window_bounds = array<i64: 1, 32>}, {pipeline_mode = #tpu.pipeline_mode<synchronous>, transform_indices = @transform_9, window_bounds = array<i64: 32, 32>}]} {
    %c0 = arith.constant 0 : index
    %c0_0 = arith.constant 0 : index
    %0 = vector.load %arg1[%c0, %c0_0] : memref<32x32xf32, #tpu.memory_space<vmem>>, vector<32x32xf32>
    %c0_1 = arith.constant 0 : index
    %c0_2 = arith.constant 0 : index
    %1 = vector.load %arg2[%c0_1, %c0_2] : memref<32x32xf32, #tpu.memory_space<vmem>>, vector<32x32xf32>
    %cst = arith.constant dense<0.000000e+00> : vector<32x32xf32>
    %2 = tpu.matmul %1, %0, %cst {dimension_numbers = #tpu.dot_dimension_numbers<[1], [0], [0], [1], [0, 0, 1, 1], [], []>} : vector<32x32xf32>, vector<32x32xf32>, vector<32x32xf32> -> vector<32x32xf32>
    %c0_3 = arith.constant 0 : index
    %c0_4 = arith.constant 0 : index
    %3 = vector.load %arg4[%c0_3, %c0_4] : memref<32x48xf32, #tpu.memory_space<vmem>>, vector<32x48xf32>
    %cst_5 = arith.constant dense<0.000000e+00> : vector<32x48xf32>
    %4 = tpu.matmul %2, %3, %cst_5 {dimension_numbers = #tpu.dot_dimension_numbers<[1], [0], [0], [1], [0, 0, 1, 1], [], []>} : vector<32x32xf32>, vector<32x48xf32>, vector<32x48xf32> -> vector<32x48xf32>
    %c0_6 = arith.constant 0 : index
    %c0_7 = arith.constant 0 : index
    %5 = vector.load %arg5[%c0_6, %c0_7] : memref<1x48xf32, #tpu.memory_space<vmem>>, vector<1x48xf32>
    %6 = vector.broadcast %5 : vector<1x48xf32> to vector<32x48xf32>
    %7 = arith.addf %4, %6 : vector<32x48xf32>
    %8 = vector.extract_strided_slice %7 {offsets = [0, 0], sizes = [32, 16], strides = [1, 1]} : vector<32x48xf32> to vector<32x16xf32>
    %9 = vector.extract_strided_slice %7 {offsets = [0, 16], sizes = [32, 16], strides = [1, 1]} : vector<32x48xf32> to vector<32x16xf32>
    %10 = vector.extract_strided_slice %7 {offsets = [0, 32], sizes = [32, 16], strides = [1, 1]} : vector<32x48xf32> to vector<32x16xf32>
    %11 = vector.shape_cast %9 : vector<32x16xf32> to vector<8x4x16xf32>
    %cst_8 = arith.constant dense<0xFF800000> : vector<8x16xf32>
    %12 = vector.multi_reduction <maximumf>, %11, %cst_8 [1] : vector<8x4x16xf32> to vector<8x16xf32>
    %13 = vector.shape_cast %10 : vector<32x16xf32> to vector<8x4x16xf32>
    %cst_9 = arith.constant dense<0xFF800000> : vector<8x16xf32>
    %14 = vector.multi_reduction <maximumf>, %13, %cst_9 [1] : vector<8x4x16xf32> to vector<8x16xf32>
    %15 = vector.shape_cast %8 : vector<32x16xf32> to vector<2x16x16xf32>
    %16 = vector.shape_cast %12 : vector<8x16xf32> to vector<2x4x16xf32>
    %17 = vector.shape_cast %14 : vector<8x16xf32> to vector<2x4x16xf32>
    %cst_10 = arith.constant dense<0.000000e+00> : vector<2x16x4xf32>
    %18 = tpu.matmul %15, %16, %cst_10 {dimension_numbers = #tpu.dot_dimension_numbers<[2], [2], [1], [1], [0, 0, 0, 1, 1, 1], [0], [0]>} : vector<2x16x16xf32>, vector<2x4x16xf32>, vector<2x16x4xf32> -> vector<2x16x4xf32>
    %cst_11 = arith.constant dense<0xFF800000> : vector<2x16xf32>
    %19 = vector.multi_reduction <maximumf>, %18, %cst_11 [2] : vector<2x16x4xf32> to vector<2x16xf32>
    %20 = vector.shape_cast %19 : vector<2x16xf32> to vector<2x16x1xf32>
    %21 = vector.broadcast %20 : vector<2x16x1xf32> to vector<2x16x4xf32>
    %22 = arith.subf %18, %21 : vector<2x16x4xf32>
    %23 = math.exp %22 : vector<2x16x4xf32>
    %cst_12 = arith.constant dense<0.000000e+00> : vector<2x16xf32>
    %24 = vector.multi_reduction <add>, %23, %cst_12 [2] : vector<2x16x4xf32> to vector<2x16xf32>
    %25 = vector.shape_cast %24 : vector<2x16xf32> to vector<2x16x1xf32>
    %26 = tpu.reciprocal %25 {approx = true} : vector<2x16x1xf32> -> vector<2x16x1xf32>
    %27 = vector.broadcast %26 : vector<2x16x1xf32> to vector<2x16x4xf32>
    %28 = arith.mulf %23, %27 : vector<2x16x4xf32>
    %cst_13 = arith.constant dense<0.000000e+00> : vector<2x16x16xf32>
    %29 = tpu.matmul %28, %17, %cst_13 {dimension_numbers = #tpu.dot_dimension_numbers<[2], [1], [1], [2], [0, 0, 0, 1, 1, 2], [0], [0]>} : vector<2x16x4xf32>, vector<2x4x16xf32>, vector<2x16x16xf32> -> vector<2x16x16xf32>
    %30 = vector.shape_cast %29 : vector<2x16x16xf32> to vector<32x16xf32>
    %c0_14 = arith.constant 0 : index
    %c0_15 = arith.constant 0 : index
    %31 = vector.load %arg6[%c0_14, %c0_15] : memref<16x32xf32, #tpu.memory_space<vmem>>, vector<16x32xf32>
    %cst_16 = arith.constant dense<0.000000e+00> : vector<32x32xf32>
    %32 = tpu.matmul %30, %31, %cst_16 {dimension_numbers = #tpu.dot_dimension_numbers<[1], [0], [0], [1], [0, 0, 1, 1], [], []>} : vector<32x16xf32>, vector<16x32xf32>, vector<32x32xf32> -> vector<32x32xf32>
    %c0_17 = arith.constant 0 : index
    %c0_18 = arith.constant 0 : index
    %33 = vector.load %arg7[%c0_17, %c0_18] : memref<1x32xf32, #tpu.memory_space<vmem>>, vector<1x32xf32>
    %34 = vector.broadcast %33 : vector<1x32xf32> to vector<32x32xf32>
    %35 = arith.addf %32, %34 : vector<32x32xf32>
    %c0_19 = arith.constant 0 : index
    %c0_20 = arith.constant 0 : index
    %36 = vector.load %arg8[%c0_19, %c0_20] : memref<1x32xf32, #tpu.memory_space<vmem>>, vector<1x32xf32>
    %37 = vector.broadcast %36 : vector<1x32xf32> to vector<32x32xf32>
    %38 = arith.mulf %35, %37 : vector<32x32xf32>
    %c0_21 = arith.constant 0 : index
    %c0_22 = arith.constant 0 : index
    %39 = vector.load %arg9[%c0_21, %c0_22] : memref<1x32xf32, #tpu.memory_space<vmem>>, vector<1x32xf32>
    %40 = vector.broadcast %39 : vector<1x32xf32> to vector<32x32xf32>
    %41 = arith.addf %38, %40 : vector<32x32xf32>
    %42 = arith.addf %41, %2 : vector<32x32xf32>
    %c0_23 = arith.constant 0 : index
    %c0_24 = arith.constant 0 : index
    %43 = vector.load %arg3[%c0_23, %c0_24] : memref<32x32xf32, #tpu.memory_space<vmem>>, vector<32x32xf32>
    %cst_25 = arith.constant dense<0.000000e+00> : vector<32x32xf32>
    %44 = tpu.matmul %43, %42, %cst_25 {dimension_numbers = #tpu.dot_dimension_numbers<[1], [0], [0], [1], [0, 0, 1, 1], [], []>} : vector<32x32xf32>, vector<32x32xf32>, vector<32x32xf32> -> vector<32x32xf32>
    %c0_26 = arith.constant 0 : index
    %c0_27 = arith.constant 0 : index
    %45 = vector.load %arg10[%c0_26, %c0_27] : memref<32x32xf32, #tpu.memory_space<vmem>>, vector<32x32xf32>
    tpu.vector_store %arg10[%c0_26, %c0_27], %44 {strides = array<i32>} : memref<32x32xf32, #tpu.memory_space<vmem>>, vector<32x32xf32>,
    return
  }
  func.func @transform_0(%arg0: i32) -> (i32, i32) {
    %c0_i32 = arith.constant 0 : i32
    %c0_i32_0 = arith.constant 0 : i32
    %c0_i32_1 = arith.constant 0 : i32
    return %c0_i32, %c0_i32_0 : i32, i32
  }
  func.func @transform_1(%arg0: i32) -> (i32, i32) {
    %c0_i32 = arith.constant 0 : i32
    %c0_i32_0 = arith.constant 0 : i32
    %c0_i32_1 = arith.constant 0 : i32
    return %c0_i32, %c0_i32_0 : i32, i32
  }
  func.func @transform_2(%arg0: i32) -> (i32, i32) {
    %c0_i32 = arith.constant 0 : i32
    %c0_i32_0 = arith.constant 0 : i32
    %c0_i32_1 = arith.constant 0 : i32
    return %c0_i32, %c0_i32_0 : i32, i32
  }
  func.func @transform_3(%arg0: i32) -> (i32, i32) {
    %c0_i32 = arith.constant 0 : i32
    %c0_i32_0 = arith.constant 0 : i32
    %c0_i32_1 = arith.constant 0 : i32
    return %c0_i32, %c0_i32_0 : i32, i32
  }
  func.func @transform_4(%arg0: i32) -> (i32, i32) {
    %c0_i32 = arith.constant 0 : i32
    %c0_i32_0 = arith.constant 0 : i32
    %c0_i32_1 = arith.constant 0 : i32
    return %c0_i32, %c0_i32_0 : i32, i32
  }
  func.func @transform_5(%arg0: i32) -> (i32, i32) {
    %c0_i32 = arith.constant 0 : i32
    %c0_i32_0 = arith.constant 0 : i32
    %c0_i32_1 = arith.constant 0 : i32
    return %c0_i32, %c0_i32_0 : i32, i32
  }
  func.func @transform_6(%arg0: i32) -> (i32, i32) {
    %c0_i32 = arith.constant 0 : i32
    %c0_i32_0 = arith.constant 0 : i32
    %c0_i32_1 = arith.constant 0 : i32
    return %c0_i32, %c0_i32_0 : i32, i32
  }
  func.func @transform_7(%arg0: i32) -> (i32, i32) {
    %c0_i32 = arith.constant 0 : i32
    %c0_i32_0 = arith.constant 0 : i32
    %c0_i32_1 = arith.constant 0 : i32
    return %c0_i32, %c0_i32_0 : i32, i32
  }
  func.func @transform_8(%arg0: i32) -> (i32, i32) {
    %c0_i32 = arith.constant 0 : i32
    %c0_i32_0 = arith.constant 0 : i32
    %c0_i32_1 = arith.constant 0 : i32
    return %c0_i32, %c0_i32_0 : i32, i32
  }
  func.func @transform_9(%arg0: i32) -> (i32, i32) {
    %c0_i32 = arith.constant 0 : i32
    %c0_i32_0 = arith.constant 0 : i32
    %c0_i32_1 = arith.constant 0 : i32
    return %c0_i32, %c0_i32_0 : i32, i32
  }
}

</mosaic_0001>

<bundles_post_ra>
// kernel: tpu_custom_call.1
= control target key start
LH: loop header
LB: loop body
LE: loop exit
PB: predicated region body
PF: predicated region fallthrough
CT: control target
= control target key end

     0   :  { %14 = vsyncpa [#allocation3], 0  ;;  %s1711_s0 = inlined_call_operand.hbm [shape: f32[32,32], index: 0, kind: input, shape index: {}]   ;;  %s1712_s1 = inlined_call_operand.hbm [shape: f32[32,32], index: 1, kind: input, shape index: {}]   ;;  %s1713_s2 = inlined_call_operand.hbm [shape: f32[32,32], index: 2, kind: input, shape index: {}]   ;;  %s1714_s3 = inlined_call_operand.hbm [shape: f32[32,48], index: 3, kind: input, shape index: {}]   ;;  %s1715_s4 = inlined_call_operand.vmem [shape: f32[1,48], index: 4, kind: input, shape index: {}]   ;;  %s1716_s5 = inlined_call_operand.vmem [shape: f32[16,32], index: 5, kind: input, shape index: {}]   ;;  %s1717_s6 = inlined_call_operand.vmem [shape: f32[1,32], index: 6, kind: input, shape index: {}]   ;;  %s1718_s7 = inlined_call_operand.vmem [shape: f32[1,32], index: 7, kind: input, shape index: {}]   ;;  %s1719_s8 = inlined_call_operand.vmem [shape: f32[1,32], index: 8, kind: input, shape index: {}]   ;;  %s1720_s9 = inlined_call_operand.hbm [shape: f32[32,32], index: 9, kind: output, shape index: {}]  }
   0x1   :  { %15 = vsyncpa [#allocation6], 0 }
   0x2   :  { %16 = vsyncpa [#allocation9], 0 }
   0x3   :  { %17 = vsyncpa [#allocation4], 0  ;;  %s1415_s30 = smov [#allocation5]   ;;  %s1416_s11 = smov [#allocation2]  }
   0x4   :  { %s35_s10 = sshll.u32 %s1415_s30, 4  ;;  %s23_s12 = sshll.u32 %s1416_s11, 4  ;;  %s36_s10 = int_to_ptr.vmem [resolvable:$true] %s35_s10  ;;  %s1474_s12 = int_to_ptr.vmem [resolvable:$true] %s23_s12 }
   0x5   :  { %s1297_s15 = scalar_lea.hbm %s1712_s1, 512 }
   0x6   :  { %p1298_p0 = scmp.ne.s32.totalorder %s1712_s1, %s1297_s15  ;;  %p1301_p1 = scmp.lt.u32.totalorder %s1297_s15, %s1712_s1 }
   0x8   :  { %p1303_p2 = pnand %p1301_p1, %p1298_p0 }
   0xa   :  { %1306 = shalt.err (!%p1303_p2)
}
   0xb   :  { %s1307_s20 = scalar_lea.vmem %s36_s10, 512  ;;  %p1312_p4 = scmp.lt.s32.totalorder %s36_s10, %s36_s10 }
   0xc   :  { %p1308_p3 = scmp.ne.s32.totalorder %s36_s10, %s1307_s20  ;;  %p1313_p5 = scmp.lt.s32.totalorder %s1307_s20, %s1307_s20 }
   0xe   :  { %p1314_p6 = por %p1313_p5, %p1312_p4 }
  0x10   :  { %p1315_p7 = pnand %p1314_p6, %p1308_p3 }
  0x12   :  { %1318 = shalt.err (!%p1315_p7)
}
  0x13   :  { %s1417_s21 = smov 128   ;;  %s1418_s22 = smov 8  }
  0x14   :  { %41 = dma.hbm_to_vmem [thread:$0]  %s1712_s1, 512, %s36_s10, [#allocation6], %s1417_s21, %s1417_s21, %s1418_s22  }
  0x15   :  { %s1319_s27 = scalar_lea.hbm %s1711_s0, 512 }
  0x16   :  { %p1320_p8 = scmp.ne.s32.totalorder %s1711_s0, %s1319_s27  ;;  %p1323_p9 = scmp.lt.u32.totalorder %s1319_s27, %s1711_s0 }
  0x18   :  { %p1325_p10 = pnand %p1323_p9, %p1320_p8 }
  0x1a   :  { %1328 = shalt.err (!%p1325_p10)
}
  0x1b   :  { %s1329_s13 = scalar_lea.vmem %s1474_s12, 512  ;;  %p1334_p12 = scmp.lt.s32.totalorder %s1474_s12, %s1474_s12 }
  0x1c   :  { %p1330_p11 = scmp.ne.s32.totalorder %s1474_s12, %s1329_s13  ;;  %p1335_p13 = scmp.lt.s32.totalorder %s1329_s13, %s1329_s13 }
  0x1e   :  { %p1336_p0 = por %p1335_p13, %p1334_p12 }
  0x20   :  { %p1337_p1 = pnand %p1336_p0, %p1330_p11 }
  0x22   :  { %1340 = shalt.err (!%p1337_p1)
}
  0x23   :  { %29 = dma.hbm_to_vmem [thread:$0]  %s1711_s0, 512, %s1474_s12, [#allocation3], %s1417_s21, %s1417_s21, %s1418_s22  }
  0x24   :  { %s1419_s14 = smov [#allocation7]   ;;  %s1420_s16 = smov [#allocation8]  }
  0x25   :  { %s47_s15 = sshll.u32 %s1419_s14, 4  ;;  %s59_s17 = sshll.u32 %s1420_s16, 4  ;;  %s48_s15 = int_to_ptr.vmem [resolvable:$true] %s47_s15  ;;  %s1511_s17 = int_to_ptr.vmem [resolvable:$true] %s59_s17 }
  0x26   :  { %s1341_s20 = scalar_lea.hbm %s1713_s2, 512 }
  0x27   :  { %p1342_p2 = scmp.ne.s32.totalorder %s1713_s2, %s1341_s20  ;;  %p1345_p3 = scmp.lt.u32.totalorder %s1341_s20, %s1713_s2 }
  0x29   :  { %p1347_p4 = pnand %p1345_p3, %p1342_p2 }
  0x2b   :  { %1350 = shalt.err (!%p1347_p4)
}
  0x2c   :  { %s1351_s0 = scalar_lea.vmem %s48_s15, 512  ;;  %p1356_p6 = scmp.lt.s32.totalorder %s48_s15, %s48_s15 }
  0x2d   :  { %p1352_p5 = scmp.ne.s32.totalorder %s48_s15, %s1351_s0  ;;  %p1357_p7 = scmp.lt.s32.totalorder %s1351_s0, %s1351_s0 }
  0x2f   :  { %p1358_p8 = por %p1357_p7, %p1356_p6 }
  0x31   :  { %p1359_p9 = pnand %p1358_p8, %p1352_p5 }
  0x33   :  { %1362 = shalt.err (!%p1359_p9)
}
  0x34   :  { %53 = dma.hbm_to_vmem [thread:$0]  %s1713_s2, 512, %s48_s15, [#allocation6], %s1417_s21, %s1417_s21, %s1418_s22  }
  0x35   :  { %s1363_s30 = scalar_lea.hbm %s1714_s3, 512 }
  0x36   :  { %p1364_p10 = scmp.ne.s32.totalorder %s1714_s3, %s1363_s30  ;;  %p1367_p11 = scmp.lt.u32.totalorder %s1363_s30, %s1714_s3 }
  0x38   :  { %p1369_p12 = pnand %p1367_p11, %p1364_p10 }
  0x3a   :  { %1372 = shalt.err (!%p1369_p12)
}
  0x3b   :  { %s1373_s14 = scalar_lea.vmem %s1511_s17, 512  ;;  %p1378_p0 = scmp.lt.s32.totalorder %s1511_s17, %s1511_s17 }
  0x3c   :  { %p1374_p13 = scmp.ne.s32.totalorder %s1511_s17, %s1373_s14  ;;  %p1379_p1 = scmp.lt.s32.totalorder %s1373_s14, %s1373_s14 }
  0x3e   :  { %p1380_p2 = por %p1379_p1, %p1378_p0 }
  0x40   :  { %p1381_p3 = pnand %p1380_p2, %p1374_p13 }
  0x42   :  { %1384 = shalt.err (!%p1381_p3)
}
  0x43   :  { %65 = dma.hbm_to_vmem [thread:$0]  %s1714_s3, 512, %s1511_s17, [#allocation9], %s1417_s21, %s1417_s21, %s1418_s22  }
  0x44   :  { %1407 = dma.done.wait [#allocation3], 512  }
  0x45   :  { %1408 = vsyncadd [#allocation3], 4294966784 }
  0x46   :  { %1409 = dma.done.wait [#allocation6], 1024  }
  0x47   :  { %1410 = vsyncadd [#allocation6], 4294966272 }
  0x48   :  { %1411 = dma.done.wait [#allocation9], 512  }
  0x49   :  { %1412 = vsyncadd [#allocation9], 4294966784  ;;  %vm96_vm0 = vcmask 261120   ;;  %v88_v0 = vld [vmem:[#allocation2] sm:$0xff]  ;;  %v89_v1 = vld [vmem:[#allocation2 + $0x8] sm:$0xff]  ;;  %vm314_vm1 = vcmask 257152  }
  0x4a   :  { %v90_v2 = vld [vmem:[#allocation2 + $0x10] sm:$0xff]  ;;  %v1244_v3 = vpack.c.bf16 %v89_v1, %v88_v0  ;;  %v91_v4 = vld [vmem:[#allocation2 + $0x18] sm:$0xff]  ;;  %v92_v5 = vld [vmem:[#allocation5] sm:$0xff]  ;;  %vm371_vm2 = vcmask 388352   ;;  %vm440_vm3 = vcmask 130048   ;;  %vm432_vm4 = vcmask 1041409  }
  0x4b   :  { %v1248_v6 = vpack.c.bf16 %v91_v4, %v90_v2  ;;  %1180 = vmatprep.mubr.msk.f32.mxu0 %vm96_vm0, %v92_v5  ;;  %v194_v7 = vld [vmem:[#allocation8] sm:$0xff]  ;;  %v195_v8 = vld [vmem:[#allocation8 + $0x8] sm:$0xff]  ;;  %v196_v9 = vld [vmem:[#allocation8 + $0x10] sm:$0xff]  ;;  %vm434_vm5 = vcmask 1042434   ;;  %vm436_vm6 = vcmask 1043459   ;;  %vm612_vm7 = vcmask 31744  }
  0x4c   :  { %1245 = vmatprep.subr.bf16.mxu0 %v1244_v3  ;;  %v197_v10 = vld [vmem:[#allocation8 + $0x18] sm:$0xff]  ;;  %v1252_v11 = vpack.c.bf16 %v195_v8, %v194_v7  ;;  %v93_v13 = vld [vmem:[#allocation5 + $0x8] sm:$0xff]  ;;  %v94_v14 = vld [vmem:[#allocation5 + $0x10] sm:$0xff]  ;;  %s1422_s17 = smov 96   ;;  %vm672_vm8 = vcmask 1043456  }
  0x4d   :  { %1247 = vmatpush3.bf16.msra.mxu0 %v1244_v3  ;;  %v1256_v12 = vpack.c.bf16 %v197_v10, %v196_v9  ;;  %v95_v15 = vld [vmem:[#allocation5 + $0x18] sm:$0xff]  ;;  %v1102_v20 = vld [vmem:[%s1715_s4] ss:$0 sm:$0xff]  ;;  %s1421_s4 = smov 112  }
  0x4e   :  { %1249 = vmatprep.subr.bf16.mxu0 %v1248_v6  ;;  %1253 = vmatprep.subr.bf16.mxu1 %v1252_v11 }
  0x4f   :  { %1255 = vmatpush3.bf16.msra.mxu1 %v1252_v11 }
  0x50   :  { %1257 = vmatprep.subr.bf16.mxu1 %v1256_v12 }
  0x51   :  { %1251 = vmatpush3.bf16.msra.mxu0 %v1248_v6 }
  0x53   :  { %1259 = vmatpush3.bf16.msra.mxu1 %v1256_v12 }
  0x54   :  { %1181 = vmatmul.mubr.msk.f32.vlgmr.msra.gmra.mrb[0].mxu0 %vm96_vm0, %v93_v13 }
  0x55   :  { %1183 = vmatprep.mubr.msk.f32.mxu0 %vm96_vm0, %v94_v14 }
  0x58   :  { %1184 = vmatmul.mubr.msk.f32.gmra.mrb[2].mxu0 %vm96_vm0, %v95_v15 }
 0x127   :  { %v1552_v16 = vpop.f32.mrb[0].mxu0 }
 0x128   :  { %v1554_v17 = vpop.f32.mrb[1].mxu0 }
 0x129   :  { %1194 = vmatprep.mubr.msk.f32.mxu1 %vm96_vm0, %v1554_v17 }
 0x12a   :  { %1195 = vmatmul.mubr.msk.f32.vlgmr.msra.gmra.mrb[0].mxu1 %vm96_vm0, %v1552_v16 }
 0x12b   :  { %v1560_v18 = vpop.f32.mrb[2].mxu0 }
 0x12c   :  { %v1562_v19 = vpop.f32.mrb[3].mxu0 }
 0x12d   :  { %1197 = vmatprep.mubr.msk.f32.mxu1 %vm96_vm0, %v1562_v19 }
 0x12e   :  { %1198 = vmatmul.mubr.msk.f32.gmra.mrb[2].mxu1 %vm96_vm0, %v1560_v18 }
 0x1fd   :  { %v1196_v21 = vpop.f32.mrb[0].mxu1 }
 0x1fe   :  { %v1571_v22 = vadd.f32 %v1196_v21, %v1102_v20  ;;  %v283_v23 = vpop.f32.mrb[1].mxu1 }
 0x1ff   :  { %v284_v24 = vadd.f32 %v1102_v20, %v283_v23 }
 0x200   :  { %v1575_v25 = vcombine.high %v1571_v22, %v1571_v22  ;;  %v329_v26 = vsel %vm314_vm1, %v1571_v22, -inf  ;;  %v386_v27 = vsel %vm371_vm2, %v1571_v22, -inf }
 0x201   :  { %v330_v28 = vrot.slane %v329_v26, 4  ;;  %v387_v29 = vrot.slane %v386_v27, 4  ;;  %v306_v30 = vcombine.high %v284_v24, %v284_v24  ;;  %v315_v31 = vsel %vm314_vm1, %v284_v24, -inf  ;;  %v1199_v32 = vpop.f32.mrb[2].mxu1  ;;  %1202 = vmatprep.mubr.msk.f32.mxu0 %vm440_vm3, %v284_v24 }
 0x202   :  { %v1585_v33 = vsel %vm371_vm2, %v1575_v25, -inf  ;;  %v316_v34 = vrot.slane %v315_v31, 4  ;;  %v372_v35 = vsel %vm371_vm2, %v284_v24, -inf  ;;  %v1588_v36 = vadd.f32 %v1199_v32, %v1102_v20  ;;  %v293_v37 = vpop.f32.mrb[3].mxu1 }
 0x203   :  { %v331_v38 = vmax.f32 %v329_v26, %v330_v28  ;;  %v1590_v39 = vmax.f32 %v386_v27, %v387_v29  ;;  %v322_v40 = vsel %vm314_vm1, %v306_v30, -inf  ;;  %v373_v43 = vrot.slane %v372_v35, 4 }
 0x204   :  { %v317_v41 = vmax.f32 %v315_v31, %v316_v34  ;;  %v323_v42 = vrot.slane %v322_v40, 4  ;;  %v379_v44 = vsel %vm371_vm2, %v306_v30, -inf  ;;  %v394_v45 = vrot.slane %v1585_v33, 4 }
 0x205   :  { %v380_v46 = vrot.slane %v379_v44, 4  ;;  %v309_v47 = vcombine.high %v1588_v36, %v1588_v36  ;;  %v357_v48 = vsel %vm314_vm1, %v1588_v36, -inf  ;;  %v374_v51 = vmax.f32 %v372_v35, %v373_v43 }
 0x206   :  { %v318_v49 = vrot.slane %v317_v41, 2  ;;  %v324_v50 = vmax.f32 %v322_v40, %v323_v42  ;;  %v358_v52 = vrot.slane %v357_v48, 4  ;;  %v414_v55 = vsel %vm371_vm2, %v1588_v36, -inf }
 0x207   :  { %v1599_v53 = vmax.f32 %v379_v44, %v380_v46  ;;  %v364_v54 = vsel %vm314_vm1, %v309_v47, -inf  ;;  %v1605_v56 = vsel %vm371_vm2, %v309_v47, -inf  ;;  %v389_v57 = vrot.slane %v1590_v39, 2 }
 0x208   :  { %v375_v58 = vrot.slane %v374_v51, 2  ;;  %v359_v59 = vmax.f32 %v357_v48, %v358_v52  ;;  %v415_v60 = vrot.slane %v414_v55, 4  ;;  %v365_v62 = vrot.slane %v364_v54, 4 }
 0x209   :  { %v382_v61 = vrot.slane %v1599_v53, 2  ;;  %v294_v63 = vadd.f32 %v1102_v20, %v293_v37  ;;  %v319_v0 = vmax.f32 %v317_v41, %v318_v49  ;;  %v422_v3 = vrot.slane %v1605_v56, 4 }
 0x20a   :  { %v360_v1 = vrot.slane %v359_v59, 2  ;;  %v416_v2 = vmax.f32 %v414_v55, %v415_v60  ;;  %v325_v4 = vrot.slane %v324_v50, 2  ;;  %v332_v20 = vrot.slane %v331_v38, 2 }
 0x20b   :  { %v308_v5 = vcombine.high %v294_v63, %v294_v63  ;;  %v343_v6 = vsel %vm314_vm1, %v294_v63, -inf  ;;  %v400_v7 = vsel %vm371_vm2, %v294_v63, -inf  ;;  %1207 = vmatprep.mubr.msk.f32.mxu1 %vm440_vm3, %v294_v63  ;;  %v320_v8 = vrot.slane %v319_v0, 1 }
 0x20c   :  { %v417_v9 = vrot.slane %v416_v2, 2  ;;  %v344_v10 = vrot.slane %v343_v6, 4  ;;  %v401_v11 = vrot.slane %v400_v7, 4  ;;  %v326_v12 = vmax.f32 %v324_v50, %v325_v4 }
 0x20d   :  { %v350_v13 = vsel %vm314_vm1, %v308_v5, -inf  ;;  %v407_v14 = vsel %vm371_vm2, %v308_v5, -inf  ;;  %v321_v15 = vmax.f32 %v319_v0, %v320_v8  ;;  %v333_v28 = vmax.f32 %v331_v38, %v332_v20 }
 0x20e   :  { %v345_v21 = vmax.f32 %v343_v6, %v344_v10  ;;  %v351_v23 = vrot.slane %v350_v13, 4  ;;  %v402_v24 = vmax.f32 %v400_v7, %v401_v11  ;;  %v408_v26 = vrot.slane %v407_v14, 4 }
 0x20f   :  { %v327_v27 = vrot.slane %v326_v12, 1  ;;  %v336_v29 = vsel %vm314_vm1, %v1575_v25, -inf  ;;  %v361_v30 = vmax.f32 %v359_v59, %v360_v1  ;;  %v334_v40 = vrot.slane %v333_v28, 1 }
 0x210   :  { %v346_v31 = vrot.slane %v345_v21, 2  ;;  %v352_v32 = vmax.f32 %v350_v13, %v351_v23  ;;  %v403_v34 = vrot.slane %v402_v24, 2  ;;  %v409_v35 = vmax.f32 %v407_v14, %v408_v26 }
 0x211   :  { %v328_v37 = vmax.f32 %v326_v12, %v327_v27  ;;  %v337_v41 = vrot.slane %v336_v29, 4  ;;  %v362_v42 = vrot.slane %v361_v30, 1  ;;  %v376_v48 = vmax.f32 %v374_v51, %v375_v58 }
 0x212   :  { %v347_v43 = vmax.f32 %v345_v21, %v346_v31  ;;  %v353_v44 = vrot.slane %v352_v32, 2  ;;  %v404_v46 = vmax.f32 %v402_v24, %v403_v34  ;;  %v410_v47 = vrot.slane %v409_v35, 2 }
 0x213   :  { %v335_v49 = vmax.f32 %v333_v28, %v334_v40  ;;  %v338_v38 = vmax.f32 %v336_v29, %v337_v41  ;;  %v433_v50 = vsel %vm432_vm4, %v328_v37, %v321_v15  ;;  %v363_v55 = vmax.f32 %v361_v30, %v362_v42 }
 0x214   :  { %v348_v25 = vrot.slane %v347_v43, 1  ;;  %v354_v52 = vmax.f32 %v352_v32, %v353_v44  ;;  %v366_v59 = vmax.f32 %v364_v54, %v365_v62  ;;  %v405_v63 = vrot.slane %v404_v46, 1 }
 0x215   :  { %v339_v60 = vrot.slane %v338_v38, 2  ;;  %v411_v0 = vmax.f32 %v409_v35, %v410_v47  ;;  %v418_v1 = vmax.f32 %v416_v2, %v417_v9  ;;  %v435_v4 = vsel %vm434_vm5, %v335_v49, %v433_v50 }
 0x216   :  { %v349_v5 = vmax.f32 %v347_v43, %v348_v25  ;;  %v355_v6 = vrot.slane %v354_v52, 1  ;;  %v367_v7 = vrot.slane %v366_v59, 2  ;;  %v423_v58 = vmax.f32 %v1605_v56, %v422_v3 }
 0x217   :  { %v340_v8 = vmax.f32 %v338_v38, %v339_v60  ;;  %v412_v10 = vrot.slane %v411_v0, 1  ;;  %v419_v51 = vrot.slane %v418_v1, 1  ;;  %v377_v13 = vrot.slane %v376_v48, 1 }
 0x218   :  { %v356_v11 = vmax.f32 %v354_v52, %v355_v6  ;;  %v368_v12 = vmax.f32 %v366_v59, %v367_v7  ;;  %v383_v54 = vmax.f32 %v1599_v53, %v382_v61  ;;  %v406_v14 = vmax.f32 %v404_v46, %v405_v63 }
 0x219   :  { %v341_v62 = vrot.slane %v340_v8, 1  ;;  %v413_v2 = vmax.f32 %v411_v0, %v412_v10  ;;  %v424_v9 = vrot.slane %v423_v58, 2  ;;  %v420_v21 = vmax.f32 %v418_v1, %v419_v51 }
 0x21a   :  { %v369_v15 = vrot.slane %v368_v12, 1  ;;  %v526_v20 = vsel %vm432_vm4, %v356_v11, %v349_v5  ;;  %v384_v23 = vrot.slane %v383_v54, 1  ;;  %v378_v3 = vmax.f32 %v376_v48, %v377_v13 }
 0x21b   :  { %v342_v24 = vmax.f32 %v340_v8, %v341_v62  ;;  %v425_v26 = vmax.f32 %v423_v58, %v424_v9  ;;  %v754_v56 = vsel %vm432_vm4, %v413_v2, %v406_v14  ;;  %v527_v27 = vsel %vm434_vm5, %v363_v55, %v526_v20 }
 0x21c   :  { %v755_v28 = vsel %vm434_vm5, %v420_v21, %v754_v56  ;;  %v385_v29 = vmax.f32 %v383_v54, %v384_v23  ;;  %v390_v53 = vmax.f32 %v1590_v39, %v389_v57  ;;  %v370_v30 = vmax.f32 %v368_v12, %v369_v15  ;;  %v842_v23 = vld [vmem:[%s1716_s5] sm:$0xff] }
 0x21d   :  { %v437_v61 = vsel %vm436_vm6, %v342_v24, %v435_v4  ;;  %v426_v31 = vrot.slane %v425_v26, 1  ;;  %v395_v32 = vmax.f32 %v1585_v33, %v394_v45  ;;  %v843_v24 = vld [vmem:[%s1716_s5 + $0x8] sm:$0xff] }
 0x21e   :  { %438 = vrot.lane.b32.xlu0 %v437_v61, %s1421_s4  ;;  %v391_v34 = vrot.slane %v390_v53, 1  ;;  %v661_v35 = vsel %vm432_vm4, %v385_v29, %v378_v3  ;;  %v528_v37 = vsel %vm436_vm6, %v370_v30, %v527_v27  ;;  %v1260_v3 = vpack.c.bf16 %v843_v24, %v842_v23 }
 0x21f   :  { %v427_v40 = vmax.f32 %v425_v26, %v426_v31  ;;  %v396_v41 = vrot.slane %v395_v32, 2 }
 0x220   :  { %v392_v42 = vmax.f32 %v390_v53, %v391_v34 }
 0x221   :  { %v756_v39 = vsel %vm436_vm6, %v427_v40, %v755_v28  ;;  %v397_v57 = vmax.f32 %v395_v32, %v396_v41  ;;  %v974_v40 = vld [vmem:[#allocation7] sm:$0xff] }
 0x222   :  { %529 = vrot.lane.b32.xlu0 %v528_v37, %s1421_s4  ;;  %v662_v43 = vsel %vm434_vm5, %v392_v42, %v661_v35  ;;  %v1119_v41 = vld [vmem:[%s1717_s6] ss:$0 sm:$0xff]  ;;  %s1423_s6 = smov [#allocation10]  }
 0x223   :  { %v398_v44 = vrot.slane %v397_v57, 1 }
 0x225   :  { %v399_v46 = vmax.f32 %v397_v57, %v398_v44  ;;  %v1125_v44 = vld [vmem:[%s1719_s8] ss:$0 sm:$0xff] }
 0x227   :  { %v663_v33 = vsel %vm436_vm6, %v399_v46, %v662_v43 }
 0x290   :  { %v439_v45 = vpop.permute.xlu0 %438 }
 0x291   :  { %1200 = vmatprep.subr.msk.mxu0 %vm440_vm3, %v439_v45 }
 0x292   :  { %1201 = vmatpush3.xpose.msk.msra.mxu0 %vm440_vm3, %v439_v45 }
 0x294   :  { %v530_v47 = vpop.permute.xlu0 %529 }
 0x295   :  { %1203 = vmatmul.mubr.msk.f32.vlgmr.msra.gmra.mrb[4].mxu0 %vm440_vm3, %v1571_v22  ;;  %1205 = vmatprep.subr.msk.mxu1 %vm440_vm3, %v530_v47 }
 0x296   :  { %1206 = vmatpush3.xpose.msk.msra.mxu1 %vm440_vm3, %v530_v47 }
 0x299   :  { %1208 = vmatmul.mubr.msk.f32.vlgmr.msra.gmra.mrb[4].mxu1 %vm440_vm3, %v1588_v36 }
 0x368   :  { %v1204_v48 = vpop.f32.mrb[4].mxu0 }
 0x369   :  { %v513_v49 = vpop.f32.mrb[5].mxu0  ;;  %v616_v52 = vsel %vm612_vm7, %v1204_v48, -inf }
 0x36a   :  { %v613_v38 = vsel %vm612_vm7, %v513_v49, -inf }
 0x36b   :  { %614 = vmax.xlane.f32.xlu1 %v613_v38 }
 0x36c   :  { %v1209_v50 = vpop.f32.mrb[4].mxu1 }
 0x36d   :  { %v603_v25 = vpop.f32.mrb[5].mxu1  ;;  %v622_v22 = vsel %vm612_vm7, %v1209_v50, -inf }
 0x36e   :  { %v619_v55 = vsel %vm612_vm7, %v603_v25, -inf }
 0x36f   :  { %617 = vmax.xlane.f32.xlu1 %v616_v52  ;;  %620 = vmax.xlane.f32.xlu0 %v619_v55 }
 0x373   :  { %623 = vmax.xlane.f32.xlu1 %v622_v22 }
 0x385   :  { %757 = vrot.lane.b32.xlu0 %v756_v39, %s1422_s17  ;;  %v1124_v39 = vld [vmem:[%s1718_s7] ss:$0 sm:$0xff]  ;;  %s1084_s7 = sshll.u32 %s1423_s6, 4  ;;  %s1085_s7 = int_to_ptr.vmem [resolvable:$true] %s1084_s7 }
 0x386   :  { %s1385_s8 = scalar_lea.vmem %s1085_s7, 512  ;;  %p1390_p5 = scmp.lt.s32.totalorder %s1085_s7, %s1085_s7 }
 0x387   :  { %p1386_p4 = scmp.ne.s32.totalorder %s1085_s7, %s1385_s8  ;;  %p1391_p6 = scmp.lt.s32.totalorder %s1385_s8, %s1385_s8 }
 0x389   :  { %p1392_p7 = por %p1391_p6, %p1390_p5 }
 0x38b   :  { %p1393_p8 = pnand %p1392_p7, %p1386_p4 }
 0x3f8   :  { %v615_v36 = vpop.xlane.xlu1 %614 }
 0x3f9   :  { %v625_v59 = vsub.f32 %v513_v49, %v615_v36 }
 0x3fb   :  { %v629_v1 = vmul.f32 1.442695, %v625_v59 }
 0x3fc   :  { %v618_v60 = vpop.xlane.xlu1 %617  ;;  %v621_v63 = vpop.xlane.xlu0 %620 }
 0x3fd   :  { %v626_v0 = vsub.f32 %v1204_v48, %v618_v60  ;;  %v627_v8 = vsub.f32 %v603_v25, %v621_v63 }
 0x3ff   :  { %v631_v4 = vmul.f32 1.442695, %v626_v0  ;;  %v633_v51 = vmul.f32 1.442695, %v627_v8 }
 0x400   :  { %v624_v5 = vpop.xlane.xlu1 %623  ;;  %v758_v6 = vpop.permute.xlu0 %757 }
 0x401   :  { %1281 = vpow2.f32 %v631_v4  ;;  %v628_v7 = vsub.f32 %v1209_v50, %v624_v5  ;;  %1215 = vmatprep.subr.msk.mxu1 %vm672_vm8, %v758_v6  ;;  %v976_v5 = vld [vmem:[#allocation7 + $0x10] sm:$0xff] }
 0x402   :  { %1216 = vmatpush3.msk.msra.mxu1 %vm672_vm8, %v758_v6  ;;  %1283 = vpow2.f32 %v629_v1 }
 0x403   :  { %v635_v10 = vmul.f32 1.442695, %v628_v7 }
 0x405   :  { %1285 = vpow2.f32 %v635_v10 }
 0x406   :  { %1287 = vpow2.f32 %v633_v51 }
 0x40b   :  { %v1282_v58 = vpop.eup %1281 }
 0x40c   :  { %v640_v11 = vsel %vm612_vm7, %v1282_v58, 0.0  ;;  %v1284_v12 = vpop.eup %1283 }
 0x40d   :  { %641 = vadd.xlane.f32.xlu1 %v640_v11  ;;  %v637_v13 = vsel %vm612_vm7, %v1284_v12, 0.0 }
 0x40f   :  { %v1286_v54 = vpop.eup %1285 }
 0x410   :  { %v646_v62 = vsel %vm612_vm7, %v1286_v54, 0.0  ;;  %v1288_v14 = vpop.eup %1287 }
 0x411   :  { %638 = vadd.xlane.f32.xlu1 %v637_v13  ;;  %v643_v2 = vsel %vm612_vm7, %v1288_v14, 0.0 }
 0x415   :  { %647 = vadd.xlane.f32.xlu1 %v646_v62 }
 0x419   :  { %644 = vadd.xlane.f32.xlu1 %v643_v2 }
 0x42a   :  { %664 = vrot.lane.b32.xlu1 %v663_v33, %s1422_s17 }
 0x49a   :  { %v642_v9 = vpop.xlane.xlu1 %641 }
 0x49b   :  { %1289 = vrcp.f32 %v642_v9 }
 0x49e   :  { %v639_v15 = vpop.xlane.xlu1 %638 }
 0x49f   :  { %1291 = vrcp.f32 %v639_v15 }
 0x4a2   :  { %v648_v20 = vpop.xlane.xlu1 %647 }
 0x4a3   :  { %1293 = vrcp.f32 %v648_v20 }
 0x4a5   :  { %v1290_v26 = vpop.eup %1289 }
 0x4a6   :  { %v645_v21 = vpop.xlane.xlu1 %644  ;;  %v654_v29 = vmul.f32 %v1290_v26, %v1282_v58 }
 0x4a7   :  { %1295 = vrcp.f32 %v645_v21 }
 0x4a9   :  { %v1292_v56 = vpop.eup %1291 }
 0x4aa   :  { %v665_v27 = vpop.permute.xlu1 %664  ;;  %v653_v28 = vmul.f32 %v1292_v56, %v1284_v12 }
 0x4ab   :  { %1210 = vmatprep.subr.msk.mxu0 %vm672_vm8, %v665_v27 }
 0x4ac   :  { %1211 = vmatpush3.msk.msra.mxu0 %vm672_vm8, %v665_v27  ;;  %1212 = vmatprep.mubr.msk.f32.mxu0 %vm612_vm7, %v653_v28 }
 0x4ad   :  { %1213 = vmatmul.mubr.msk.f32.vlgmr.msra.gmra.mrb[6].mxu0 %vm612_vm7, %v654_v29  ;;  %1261 = vmatprep.subr.bf16.mxu0 %v1260_v3  ;;  %v1294_v53 = vpop.eup %1293 }
 0x4ae   :  { %1263 = vmatpush3.bf16.msra.mxu0 %v1260_v3  ;;  %v656_v31 = vmul.f32 %v1294_v53, %v1286_v54 }
 0x4b1   :  { %v1296_v61 = vpop.eup %1295 }
 0x4b2   :  { %v655_v30 = vmul.f32 %v1296_v61, %v1288_v14 }
 0x4b4   :  { %1217 = vmatprep.mubr.msk.f32.mxu1 %vm612_vm7, %v655_v30 }
 0x4b5   :  { %1218 = vmatmul.mubr.msk.f32.vlgmr.msra.gmra.mrb[6].mxu1 %vm612_vm7, %v656_v31 }
 0x4b6   :  { %1238 = vmatprep.mubr.msk.f32.mxu1 %vm96_vm0, %v974_v40 }
 0x580   :  { %v1214_v32 = vpop.f32.mrb[6].mxu0 }
 0x581   :  { %v741_v34 = vpop.f32.mrb[7].mxu0 }
 0x582   :  { %1224 = vmatprep.mubr.msk.f32.mxu0 %vm440_vm3, %v741_v34 }
 0x583   :  { %1225 = vmatmul.mubr.msk.f32.vlgmr.msra.gmra.mrb[8].mxu0 %vm440_vm3, %v1214_v32 }
 0x588   :  { %v1219_v35 = vpop.f32.mrb[6].mxu1 }
 0x589   :  { %v833_v37 = vpop.f32.mrb[7].mxu1 }
 0x58a   :  { %1227 = vmatprep.mubr.msk.f32.mxu0 %vm440_vm3, %v833_v37 }
 0x58b   :  { %1228 = vmatmul.mubr.msk.f32.gmra.mrb[10].mxu0 %vm440_vm3, %v1219_v35 }
 0x656   :  { %v1226_v42 = vpop.f32.mrb[8].mxu0 }
 0x657   :  { %v935_v57 = vadd.f32 %v1226_v42, %v1119_v41  ;;  %v929_v43 = vpop.f32.mrb[9].mxu0 }
 0x658   :  { %v930_v46 = vadd.f32 %v1119_v41, %v929_v43 }
 0x659   :  { %v956_v33 = vmul.f32 %v1124_v39, %v935_v57 }
 0x65a   :  { %v955_v45 = vmul.f32 %v1124_v39, %v930_v46 }
 0x65b   :  { %v967_v47 = vadd.f32 %v1125_v44, %v956_v33 }
 0x65c   :  { %v966_v48 = vadd.f32 %v1125_v44, %v955_v45 }
 0x65d   :  { %v971_v49 = vadd.f32 %v1552_v16, %v967_v47  ;;  %v975_v16 = vld [vmem:[#allocation7 + $0x8] sm:$0xff] }
 0x65e   :  { %v1229_v38 = vpop.f32.mrb[10].mxu0  ;;  %v970_v50 = vadd.f32 %v966_v48, %v1554_v17  ;;  %v977_v17 = vld [vmem:[#allocation7 + $0x18] sm:$0xff] }
 0x65f   :  { %v945_v25 = vadd.f32 %v1229_v38, %v1119_v41  ;;  %v939_v52 = vpop.f32.mrb[11].mxu0 }
 0x660   :  { %v940_v55 = vadd.f32 %v1119_v41, %v939_v52  ;;  %v1264_v22 = vpack.c.bf16 %v971_v49, %v970_v50 }
 0x661   :  { %v958_v36 = vmul.f32 %v1124_v39, %v945_v25 }
 0x662   :  { %v957_v59 = vmul.f32 %v1124_v39, %v940_v55  ;;  %1265 = vmatprep.subr.bf16.mxu1 %v1264_v22 }
 0x663   :  { %v969_v60 = vadd.f32 %v1125_v44, %v958_v36  ;;  %1267 = vmatpush3.bf16.msra.mxu1 %v1264_v22 }
 0x664   :  { %v968_v63 = vadd.f32 %v1125_v44, %v957_v59 }
 0x665   :  { %v973_v0 = vadd.f32 %v1560_v18, %v969_v60 }
 0x666   :  { %v972_v1 = vadd.f32 %v968_v63, %v1562_v19 }
 0x668   :  { %v1268_v4 = vpack.c.bf16 %v973_v0, %v972_v1 }
 0x66a   :  { %1269 = vmatprep.subr.bf16.mxu1 %v1268_v4 }
 0x66b   :  { %1271 = vmatpush3.bf16.msra.mxu1 %v1268_v4 }
 0x66e   :  { %1239 = vmatmul.mubr.msk.f32.vlgmr.msra.gmra.mrb[8].mxu1 %vm96_vm0, %v975_v16 }
 0x66f   :  { %1241 = vmatprep.mubr.msk.f32.mxu1 %vm96_vm0, %v976_v5 }
 0x672   :  { %1242 = vmatmul.mubr.msk.f32.gmra.mrb[10].mxu1 %vm96_vm0, %v977_v17 }
 0x741   :  { %v1240_v6 = vpop.f32.mrb[8].mxu1 }
 0x742   :  { %1076 = vst.msk [vmem:[#allocation10 + $0x8] sm:$0xff] %vm96_vm0, %v1240_v6  ;;  %v1056_v7 = vpop.f32.mrb[9].mxu1 }
 0x743   :  { %1075 = vst.msk [vmem:[#allocation10] sm:$0xff] %vm96_vm0, %v1056_v7 }
 0x745   :  { %v1243_v18 = vpop.f32.mrb[10].mxu1 }
 0x746   :  { %1078 = vst.msk [vmem:[#allocation10 + $0x18] sm:$0xff] %vm96_vm0, %v1243_v18  ;;  %v1066_v19 = vpop.f32.mrb[11].mxu1 }
 0x747   :  { %1077 = vst.msk [vmem:[#allocation10 + $0x10] sm:$0xff] %vm96_vm0, %v1066_v19 }
 0x748   :  { %1396 = shalt.err (!%p1393_p8)
}
 0x749   :  { %s1397_s29 = scalar_lea.hbm %s1720_s9, 512 }
 0x74a   :  { %p1398_p9 = scmp.ne.s32.totalorder %s1720_s9, %s1397_s29  ;;  %p1401_p10 = scmp.lt.u32.totalorder %s1397_s29, %s1720_s9 }
 0x74c   :  { %p1403_p11 = pnand %p1401_p10, %p1398_p9 }
 0x74e   :  { %1406 = shalt.err (!%p1403_p11)
}
 0x74f   :  { %1090 = dma.vmem_to_hbm [thread:$0]  %s1085_s7, 512, %s1720_s9, [#allocation4], %s1417_s21, %s1417_s21, %s1418_s22  }
 0x750   :  { %1413 = dma.done.wait [#allocation4], 512  }
 0x751   :  { %1414 = vsyncadd [#allocation4], 4294966784 }
 0x752   :  { %1094 = vsyncpa [#allocation3], 1 }
 0x753   :  { %1095 = vsyncpa [#allocation6], 1 }
 0x754   :  { %1096 = vsyncpa [#allocation9], 1 }
 0x755   :  { %1097 = vsyncpa [#allocation4], 1 }

</bundles_post_ra>
